<compile_context>
chip_gen: v5e
topology: v5e:2x2
jax: 0.10.0
libtpu: 0.0.40
codegen_flags: <defaults>
</compile_context>

<pallas_src>
import functools
import math

import numpy as np

import jax
import jax.numpy as jnp
from jax.experimental import pallas as pl
from jax.experimental.pallas import tpu as pltpu


_LANE = 128             # samples per row (TPU lane width)
_MAX_BLOCK_ROWS = 256   # rows per grid step (multiple of 8)


# ---------------------------------------------------------------------------
# pyloudnorm K-weighting biquads (ITU-R BS.1770-4), a0-normalised.
# ---------------------------------------------------------------------------
def _high_shelf_coeffs(fs):
    G, Q, fc = 4.0, 1.0 / math.sqrt(2.0), 1500.0
    A = 10.0 ** (G / 40.0)
    w0 = 2.0 * math.pi * fc / fs
    alpha = math.sin(w0) / (2.0 * Q)
    b0 = A * ((A + 1) + (A - 1) * math.cos(w0) + 2 * math.sqrt(A) * alpha)
    b1 = -2 * A * ((A - 1) + (A + 1) * math.cos(w0))
    b2 = A * ((A + 1) + (A - 1) * math.cos(w0) - 2 * math.sqrt(A) * alpha)
    a0 = (A + 1) - (A - 1) * math.cos(w0) + 2 * math.sqrt(A) * alpha
    a1 = 2 * ((A - 1) - (A + 1) * math.cos(w0))
    a2 = (A + 1) - (A - 1) * math.cos(w0) - 2 * math.sqrt(A) * alpha
    return (b0 / a0, b1 / a0, b2 / a0, a1 / a0, a2 / a0)


def _high_pass_coeffs(fs):
    Q, fc = 0.5, 38.0
    w0 = 2.0 * math.pi * fc / fs
    alpha = math.sin(w0) / (2.0 * Q)
    b0 = (1 + math.cos(w0)) / 2.0
    b1 = -(1 + math.cos(w0))
    b2 = (1 + math.cos(w0)) / 2.0
    a0 = 1 + alpha
    a1 = -2 * math.cos(w0)
    a2 = 1 - alpha
    return (b0 / a0, b1 / a0, b2 / a0, a1 / a0, a2 / a0)


@functools.lru_cache(maxsize=None)
def _filter_constants(sample_rate, L):
    """Exact block state-space matrices for the K-weighting cascade (f64 -> f32).

      Tt [L, L]  : x_row @ Tt  -> forced (zero-state) response inside one row
      Sm [L, 4]  : x_row @ Sm  -> state increment accumulated over one row
      Zt [8, L]  : s_row @ Zt  -> zero-input response of one row (4 live rows)
      M  [4, 4]  : s'  = s @ M + d   (row-vector state carry across rows)
    """
    b0s, b1s, b2s, a1s, a2s = _high_shelf_coeffs(sample_rate)
    b0h, b1h, b2h, a1h, a2h = _high_pass_coeffs(sample_rate)
    b = np.convolve([b0s, b1s, b2s], [b0h, b1h, b2h])      # combined numerator
    a = np.convolve([1.0, a1s, a2s], [1.0, a1h, a2h])      # combined denominator
    b0, b1, b2, b3, b4 = b
    _, a1, a2, a3, a4 = a
    # Transposed direct-form-II state space (same recursion as scipy.lfilter):
    #   y = C s + D x ,  s' = A s + B x ,  C = e0, D = b0
    A = np.array([[-a1, 1.0, 0.0, 0.0],
                  [-a2, 0.0, 1.0, 0.0],
                  [-a3, 0.0, 0.0, 1.0],
                  [-a4, 0.0, 0.0, 0.0]], dtype=np.float64)
    B = np.array([b1 - a1 * b0, b2 - a2 * b0, b3 - a3 * b0, b4 - a4 * b0],
                 dtype=np.float64)
    D = float(b0)

    Apow = [np.eye(4)]
    for _ in range(L):
        Apow.append(Apow[-1] @ A)

    h = np.empty(L, dtype=np.float64)                      # impulse response
    h[0] = D
    for k in range(1, L):
        h[k] = Apow[k - 1][0, :] @ B                       # C A^{k-1} B

    Tt = np.zeros((L, L), dtype=np.float64)                # Tt[i, c] = h[c - i]
    for i in range(L):
        Tt[i, i:] = h[: L - i]

    Sm = np.zeros((L, 4), dtype=np.float64)                # Sm[i, m] = (A^{L-1-i} B)[m]
    for i in range(L):
        Sm[i, :] = Apow[L - 1 - i] @ B

    Zt = np.zeros((8, L), dtype=np.float64)                # Zt[n, c] = (A^c)[0, n]
    for c in range(L):
        Zt[:4, c] = Apow[c][0, :]

    M = Apow[L].T                                          # s' = s @ (A^L)^T + d

    return (Tt.astype(np.float32), Sm.astype(np.float32),
            Zt.astype(np.float32), M.astype(np.float32))


# ---------------------------------------------------------------------------
# Pallas kernel: pure map; forced response (MXU) + rank-4 zero-input response
# (4 VPU FMAs) + squaring, one full-tile lane-dense store.
# ---------------------------------------------------------------------------
def _kweight_sq_kernel(x_ref, s_ref, tt_ref, zt_ref, o_ref):
    # Forced (zero-state) response of every row: bulk MXU matmul.
    y = jnp.dot(x_ref[...], tt_ref[...], preferred_element_type=jnp.float32)
    # Zero-input response from the precomputed 4-dim row-start states: VPU FMAs.
    s = s_ref[...]                                # [R, 8] (first 4 lanes live)
    zt = zt_ref[...]                              # [8, 128]
    for n in range(4):
        y = y + s[:, n:n + 1] * zt[n:n + 1, :]
    o_ref[...] = y * y                            # K-weighted squared signal


def _kweighted_squared_signal(x2, sample_rate):
    """x2: f32[2, N] -> squared K-weighted signal (zero initial state), f32[2, Npad]."""
    n = x2.shape[1]
    lane = _LANE
    rows = -(-n // lane)
    r8 = -(-rows // 8) * 8                        # rows per signal, multiple of 8
    n_pad = r8 * lane

    Tt, Sm, Zt, M = _filter_constants(int(sample_rate), lane)
    Tt, Sm, Zt, M4 = (jnp.asarray(Tt), jnp.asarray(Sm),
                      jnp.asarray(Zt), jnp.asarray(M))

    x3 = jnp.pad(x2, ((0, 0), (0, n_pad - n))).reshape(2, r8, lane)

    # Per-row state increments (tiny: 4 floats per 128 samples).
    dd = jnp.einsum('brl,lm->brm', x3, Sm)                          # [2, r8, 4]

    # Row-start states via a log-depth associative scan of affine maps s -> s@M + d.
    A_el = jnp.broadcast_to(M4, (2, r8, 4, 4))

    def _comb(u, v):
        A1, c1 = u
        A2, c2 = v
        return (jnp.einsum('...ij,...jk->...ik', A1, A2),
                jnp.einsum('...j,...jk->...k', c1, A2) + c2)

    _, csum = jax.lax.associative_scan(_comb, (A_el, dd), axis=1)
    s_rows = jnp.concatenate(
        [jnp.zeros((2, 1, 4), jnp.float32), csum[:, :-1, :]], axis=1)  # [2, r8, 4]
    s_rows = jnp.pad(s_rows, ((0, 0), (0, 0), (0, 4)))                 # pad state to 8 lanes

    # Fold both signals into the matmul M dimension: one fully-parallel grid axis.
    total = 2 * r8
    block_rows = min(_MAX_BLOCK_ROWS, total)
    padded_total = -(-total // block_rows) * block_rows
    x_all = x3.reshape(total, lane)
    s_all = s_rows.reshape(total, 8)
    if padded_total > total:
        x_all = jnp.pad(x_all, ((0, padded_total - total), (0, 0)))
        s_all = jnp.pad(s_all, ((0, padded_total - total), (0, 0)))

    ysq = pl.pallas_call(
        _kweight_sq_kernel,
        out_shape=jax.ShapeDtypeStruct((padded_total, lane), jnp.float32),
        grid_spec=pltpu.PrefetchScalarGridSpec(
            num_scalar_prefetch=0,
            grid=(padded_total // block_rows,),
            in_specs=[
                pl.BlockSpec((block_rows, lane), lambda i: (i, 0)),  # waveform rows
                pl.BlockSpec((block_rows, 8), lambda i: (i, 0)),     # row-start states
                pl.BlockSpec((lane, lane), lambda i: (0, 0)),        # Tt (VMEM-resident)
                pl.BlockSpec((8, lane), lambda i: (0, 0)),           # Zt (VMEM-resident)
            ],
            out_specs=pl.BlockSpec((block_rows, lane), lambda i: (i, 0)),
        ),
        compiler_params=pltpu.CompilerParams(
            dimension_semantics=("parallel",)),
    )(x_all, s_all, Tt, Zt)

    return ysq[:total].reshape(2, n_pad)


# ---------------------------------------------------------------------------
# BS.1770 gating (pyloudnorm integrated_loudness) on the per-hop energies.
# Factor 2 == the two identical channels created by x.repeat(2, 1), G = [1, 1].
# ---------------------------------------------------------------------------
def _integrated_loudness_pair(ysq, n, gains_sq, sample_rate):
    hop = int(0.1 * sample_rate)                       # 100 ms step (75% overlap)
    t_total = n / sample_rate
    num_blocks = int(np.round((t_total - 0.4) / (0.4 * 0.25))) + 1   # pyloudnorm formula
    num_blocks = max(num_blocks, 1)
    n_hops = num_blocks + 3
    need = n_hops * hop

    idx = jnp.arange(ysq.shape[1])
    ysq = jnp.where(idx[None, :] < n, ysq, 0.0)        # drop padded filter tail
    if ysq.shape[1] < need:
        ysq = jnp.pad(ysq, ((0, 0), (0, need - ysq.shape[1])))
    hops = ysq[:, :need].reshape(2, n_hops, hop).sum(axis=-1)        # 100 ms energies
    hops = hops * gains_sq[:, None]                    # linear filter -> gain**2 on energies

    block_samples = 0.4 * sample_rate
    z = (hops[:, :-3] + hops[:, 1:-2] + hops[:, 2:-1] + hops[:, 3:]) / block_samples
    two_z = 2.0 * z
    l = -0.691 + 10.0 * jnp.log10(two_z)               # block loudness

    gamma_a = -70.0
    mask_a = l > gamma_a
    cnt_a = jnp.sum(mask_a, axis=1).astype(jnp.float32)
    z_avg_a = jnp.sum(jnp.where(mask_a, z, 0.0), axis=1) / cnt_a     # NaN if empty (pyloudnorm parity)
    gamma_r = -0.691 + 10.0 * jnp.log10(2.0 * z_avg_a) - 10.0

    mask_r = (l > gamma_r[:, None]) & (l > gamma_a)
    cnt_r = jnp.sum(mask_r, axis=1).astype(jnp.float32)
    z_avg_r = jnp.where(cnt_r > 0,
                        jnp.sum(jnp.where(mask_r, z, 0.0), axis=1) / cnt_r,
                        0.0)                           # np.nan_to_num of an empty mean
    lufs = -0.691 + 10.0 * jnp.log10(2.0 * z_avg_r)
    return lufs                                        # [2]


@functools.partial(jax.jit, static_argnames=("sample_rate", "peak_normalize"))
def _loudness_l1(xy, sample_rate, peak_normalize):
    n = xy.shape[1]
    if peak_normalize:
        gains = 1.0 / jnp.max(jnp.abs(xy), axis=1)     # x / x.abs().max()
    else:
        gains = jnp.ones((2,), jnp.float32)
    ysq = _kweighted_squared_signal(xy, sample_rate)   # Pallas kernel (both signals)
    lufs = _integrated_loudness_pair(ysq, n, gains * gains, sample_rate)
    return jnp.abs(lufs[0] - lufs[1])                  # l1_loss of two scalar loudnesses


class LoudnessError:
    """JAX / Pallas-TPU equivalent of the PyTorch LoudnessError module."""

    def __init__(self, sample_rate: int, peak_normalize: bool = False):
        self.sample_rate = int(sample_rate)
        self.peak_normalize = bool(peak_normalize)

    def __call__(self, input, target):
        x = jnp.reshape(jnp.asarray(input, dtype=jnp.float32), (-1,))   # == x.view(1, -1)
        y = jnp.reshape(jnp.asarray(target, dtype=jnp.float32), (-1,))
        if x.shape[0] != y.shape[0]:
            raise ValueError("input and target must have the same number of samples")
        hop = int(0.1 * self.sample_rate)
        if x.shape[0] < 4 * hop:
            raise ValueError("signal must cover at least one 400 ms gating block")
        xy = jnp.stack([x, y], axis=0)                 # both signals metered in one kernel call
        # TODO(synk): torch's .item() host transfer is omitted; a JAX scalar is returned.
        return _loudness_l1(xy, self.sample_rate, self.peak_normalize)


if __name__ == "__main__":
    sample_rate = 8000
    n_samples = 8000          # 1 second -> 10 hops, 7 gating blocks

    key = jax.random.PRNGKey(0)
    k1, k2 = jax.random.split(key)
    x = 0.5 * jax.random.normal(k1, (1, n_samples), dtype=jnp.float32)
    y = 0.25 * jax.random.normal(k2, (1, n_samples), dtype=jnp.float32)

    loss = LoudnessError(sample_rate=sample_rate, peak_normalize=False)(x, y)
    loss = jax.block_until_ready(loss)

    loss_pn = LoudnessError(sample_rate=sample_rate, peak_normalize=True)(x, y)
    loss_pn = jax.block_until_ready(loss_pn)

    assert bool(jnp.isfinite(loss)) and bool(jnp.isfinite(loss_pn))
    print("KERNEL_OK")
</pallas_src>

<mosaic_0001>
module attributes {stable_mosaic.version = 11 : i64} {
  func.func @_kweight_sq_kernel(%arg0: i32, %arg1: memref<128x128xf32, #tpu.memory_space<vmem>>, %arg2: memref<128x8xf32, #tpu.memory_space<vmem>>, %arg3: memref<128x128xf32, #tpu.memory_space<vmem>>, %arg4: memref<8x128xf32, #tpu.memory_space<vmem>>, %arg5: memref<128x128xf32, #tpu.memory_space<vmem>>) attributes {dimension_semantics = [#tpu.dimension_semantics<parallel>], iteration_bounds = array<i64: 1>, scalar_prefetch = 0 : i64, scratch_operands = 0 : i64, tpu.core_type = #tpu.core_type<tc>, window_params = [{transform_indices = @transform_0, window_bounds = array<i64: 128, 128>}, {transform_indices = @transform_1, window_bounds = array<i64: 128, 8>}, {pipeline_mode = #tpu.pipeline_mode<synchronous>, transform_indices = @transform_2, window_bounds = array<i64: 128, 128>}, {pipeline_mode = #tpu.pipeline_mode<synchronous>, transform_indices = @transform_3, window_bounds = array<i64: 8, 128>}, {transform_indices = @transform_4, window_bounds = array<i64: 128, 128>}]} {
    %c0 = arith.constant 0 : index
    %c0_0 = arith.constant 0 : index
    %0 = vector.load %arg1[%c0, %c0_0] : memref<128x128xf32, #tpu.memory_space<vmem>>, vector<128x128xf32>
    %c0_1 = arith.constant 0 : index
    %c0_2 = arith.constant 0 : index
    %1 = vector.load %arg3[%c0_1, %c0_2] : memref<128x128xf32, #tpu.memory_space<vmem>>, vector<128x128xf32>
    %cst = arith.constant dense<0.000000e+00> : vector<128x128xf32>
    %2 = tpu.matmul %0, %1, %cst {dimension_numbers = #tpu.dot_dimension_numbers<[1], [0], [0], [1], [0, 0, 1, 1], [], []>} : vector<128x128xf32>, vector<128x128xf32>, vector<128x128xf32> -> vector<128x128xf32>
    %c0_3 = arith.constant 0 : index
    %c0_4 = arith.constant 0 : index
    %3 = vector.load %arg2[%c0_3, %c0_4] : memref<128x8xf32, #tpu.memory_space<vmem>>, vector<128x8xf32>
    %c0_5 = arith.constant 0 : index
    %c0_6 = arith.constant 0 : index
    %4 = vector.load %arg4[%c0_5, %c0_6] : memref<8x128xf32, #tpu.memory_space<vmem>>, vector<8x128xf32>
    %5 = vector.extract_strided_slice %3 {offsets = [0, 0], sizes = [128, 1], strides = [1, 1]} : vector<128x8xf32> to vector<128x1xf32>
    %6 = vector.extract_strided_slice %4 {offsets = [0, 0], sizes = [1, 128], strides = [1, 1]} : vector<8x128xf32> to vector<1x128xf32>
    %7 = vector.broadcast %5 : vector<128x1xf32> to vector<128x128xf32>
    %8 = vector.broadcast %6 : vector<1x128xf32> to vector<128x128xf32>
    %9 = arith.mulf %7, %8 : vector<128x128xf32>
    %10 = arith.addf %2, %9 : vector<128x128xf32>
    %11 = vector.extract_strided_slice %3 {offsets = [0, 1], sizes = [128, 1], strides = [1, 1]} : vector<128x8xf32> to vector<128x1xf32>
    %12 = vector.extract_strided_slice %4 {offsets = [1, 0], sizes = [1, 128], strides = [1, 1]} : vector<8x128xf32> to vector<1x128xf32>
    %13 = vector.broadcast %11 : vector<128x1xf32> to vector<128x128xf32>
    %14 = vector.broadcast %12 : vector<1x128xf32> to vector<128x128xf32>
    %15 = arith.mulf %13, %14 : vector<128x128xf32>
    %16 = arith.addf %10, %15 : vector<128x128xf32>
    %17 = vector.extract_strided_slice %3 {offsets = [0, 2], sizes = [128, 1], strides = [1, 1]} : vector<128x8xf32> to vector<128x1xf32>
    %18 = vector.extract_strided_slice %4 {offsets = [2, 0], sizes = [1, 128], strides = [1, 1]} : vector<8x128xf32> to vector<1x128xf32>
    %19 = vector.broadcast %17 : vector<128x1xf32> to vector<128x128xf32>
    %20 = vector.broadcast %18 : vector<1x128xf32> to vector<128x128xf32>
    %21 = arith.mulf %19, %20 : vector<128x128xf32>
    %22 = arith.addf %16, %21 : vector<128x128xf32>
    %23 = vector.extract_strided_slice %3 {offsets = [0, 3], sizes = [128, 1], strides = [1, 1]} : vector<128x8xf32> to vector<128x1xf32>
    %24 = vector.extract_strided_slice %4 {offsets = [3, 0], sizes = [1, 128], strides = [1, 1]} : vector<8x128xf32> to vector<1x128xf32>
    %25 = vector.broadcast %23 : vector<128x1xf32> to vector<128x128xf32>
    %26 = vector.broadcast %24 : vector<1x128xf32> to vector<128x128xf32>
    %27 = arith.mulf %25, %26 : vector<128x128xf32>
    %28 = arith.addf %22, %27 : vector<128x128xf32>
    %29 = arith.mulf %28, %28 : vector<128x128xf32>
    %c0_7 = arith.constant 0 : index
    %c0_8 = arith.constant 0 : index
    %30 = vector.load %arg5[%c0_7, %c0_8] : memref<128x128xf32, #tpu.memory_space<vmem>>, vector<128x128xf32>
    tpu.vector_store %arg5[%c0_7, %c0_8], %29 {strides = array<i32>} : memref<128x128xf32, #tpu.memory_space<vmem>>, vector<128x128xf32>,
    return
  }
  func.func @transform_0(%arg0: i32) -> (i32, i32) {
    %c0_i32 = arith.constant 0 : i32
    %c0_i32_0 = arith.constant 0 : i32
    return %arg0, %c0_i32 : i32, i32
  }
  func.func @transform_1(%arg0: i32) -> (i32, i32) {
    %c0_i32 = arith.constant 0 : i32
    %c0_i32_0 = arith.constant 0 : i32
    return %arg0, %c0_i32 : i32, i32
  }
  func.func @transform_2(%arg0: i32) -> (i32, i32) {
    %c0_i32 = arith.constant 0 : i32
    %c0_i32_0 = arith.constant 0 : i32
    %c0_i32_1 = arith.constant 0 : i32
    return %c0_i32, %c0_i32_0 : i32, i32
  }
  func.func @transform_3(%arg0: i32) -> (i32, i32) {
    %c0_i32 = arith.constant 0 : i32
    %c0_i32_0 = arith.constant 0 : i32
    %c0_i32_1 = arith.constant 0 : i32
    return %c0_i32, %c0_i32_0 : i32, i32
  }
  func.func @transform_4(%arg0: i32) -> (i32, i32) {
    %c0_i32 = arith.constant 0 : i32
    %c0_i32_0 = arith.constant 0 : i32
    return %arg0, %c0_i32 : i32, i32
  }
}

</mosaic_0001>

<bundles_post_ra>
// kernel: _loudness_l1.1
= control target key start
LH: loop header
LB: loop body
LE: loop exit
PB: predicated region body
PF: predicated region fallthrough
CT: control target
= control target key end

     0   :  { %v619_v0 = vmov 0   ;;  %v620_v41 = vmov 1   ;;  %v621_v50 = vmov 2   ;;  %v622_v60 = vmov 3   ;;  %s1116_s2 = inlined_call_operand.vmem [shape: f32[128,128], index: 2, kind: input, shape index: {}]   ;;  %s1117_s1 = inlined_call_operand.vmem [shape: f32[128,8], index: 1, kind: input, shape index: {}]   ;;  %s1118_s0 = inlined_call_operand.vmem [shape: f32[128,128], index: 0, kind: input, shape index: {}]   ;;  %s1119_s3 = inlined_call_operand.vmem [shape: f32[8,128], index: 3, kind: input, shape index: {}]   ;;  %s1120_s4 = inlined_call_operand.vmem [shape: f32[128,128], index: 4, kind: output, shape index: {}]  }
   0x1   :  { %609 = vset.pattern.permute.xlu2 %v619_v0  ;;  %608 = vset.pattern.permute.xlu1 %v619_v0  ;;  %v48_v1 = vld [vmem:[%s1116_s2 + $0x78] sm:$0xff]  ;;  %v654_v2 = vld [vmem:[%s1117_s1 + $0x20] sm:$0xff]  ;;  %v659_v3 = vld [vmem:[%s1117_s1 + $0x10] sm:$0xff] }
   0x2   :  { %607 = vset.pattern.permute.xlu0 %v619_v0  ;;  %163 = vmatpush.msra.mxu0 %v48_v1  ;;  %v664_v4 = vld [vmem:[%s1117_s1] sm:$0xff]  ;;  %v47_v5 = vld [vmem:[%s1116_s2 + $0x70] sm:$0xff]  ;;  %v46_v6 = vld [vmem:[%s1116_s2 + $0x68] sm:$0xff] }
   0x3   :  { %555 = vmatpush.msra.mxu1 %v48_v1  ;;  %556 = vmatpush.msra.mxu2 %v48_v1  ;;  %v45_v7 = vld [vmem:[%s1116_s2 + $0x60] sm:$0xff]  ;;  %v44_v8 = vld [vmem:[%s1116_s2 + $0x58] sm:$0xff]  ;;  %v684_v9 = vld [vmem:[%s1117_s1 + $0x28] sm:$0xff] }
   0x4   :  { %557 = vmatpush.msra.mxu3 %v48_v1  ;;  %88 = vperm.xlu2 %609, %v654_v2   ;;  %v689_v10 = vld [vmem:[%s1117_s1 + $0x18] sm:$0xff]  ;;  %v694_v11 = vld [vmem:[%s1117_s1 + $0x8] sm:$0xff]  ;;  %v43_v12 = vld [vmem:[%s1116_s2 + $0x50] sm:$0xff] }
   0x5   :  { %78 = vperm.xlu1 %608, %v659_v3   ;;  %68 = vperm.xlu0 %607, %v664_v4   ;;  %v42_v13 = vld [vmem:[%s1116_s2 + $0x48] sm:$0xff]  ;;  %v41_v14 = vld [vmem:[%s1116_s2 + $0x40] sm:$0xff]  ;;  %v40_v15 = vld [vmem:[%s1116_s2 + $0x38] sm:$0xff] }
   0x6   :  { %164 = vmatpush.msra.mxu0 %v47_v5  ;;  %558 = vmatpush.msra.mxu1 %v47_v5  ;;  %v714_v16 = vld [vmem:[%s1117_s1 + $0x40] sm:$0xff]  ;;  %v719_v17 = vld [vmem:[%s1117_s1 + $0x38] sm:$0xff]  ;;  %v724_v18 = vld [vmem:[%s1117_s1 + $0x30] sm:$0xff] }
   0x7   :  { %559 = vmatpush.msra.mxu2 %v47_v5  ;;  %560 = vmatpush.msra.mxu3 %v47_v5  ;;  %v39_v19 = vld [vmem:[%s1116_s2 + $0x30] sm:$0xff]  ;;  %v38_v20 = vld [vmem:[%s1116_s2 + $0x28] sm:$0xff]  ;;  %v37_v21 = vld [vmem:[%s1116_s2 + $0x20] sm:$0xff] }
   0x8   :  { %165 = vmatpush.msra.mxu0 %v46_v6  ;;  %561 = vmatpush.msra.mxu1 %v46_v6  ;;  %v36_v22 = vld [vmem:[%s1116_s2 + $0x18] sm:$0xff]  ;;  %v749_v24 = vld [vmem:[%s1117_s1 + $0x50] sm:$0xff]  ;;  %v754_v25 = vld [vmem:[%s1117_s1 + $0x48] sm:$0xff] }
   0x9   :  { %562 = vmatpush.msra.mxu2 %v46_v6  ;;  %563 = vmatpush.msra.mxu3 %v46_v6  ;;  %v744_v23 = vld [vmem:[%s1117_s1 + $0x58] sm:$0xff]  ;;  %v35_v26 = vld [vmem:[%s1116_s2 + $0x10] sm:$0xff]  ;;  %v34_v27 = vld [vmem:[%s1116_s2 + $0x8] sm:$0xff] }
   0xa   :  { %166 = vmatpush.msra.mxu0 %v45_v7  ;;  %564 = vmatpush.msra.mxu1 %v45_v7  ;;  %v33_v28 = vld [vmem:[%s1116_s2] sm:$0xff]  ;;  %v783_v33 = vld [vmem:[%s1117_s1 + $0x70] sm:$0xff]  ;;  %v788_v34 = vld [vmem:[%s1117_s1 + $0x68] sm:$0xff] }
   0xb   :  { %565 = vmatpush.msra.mxu2 %v45_v7  ;;  %566 = vmatpush.msra.mxu3 %v45_v7  ;;  %v17_v29 = vld [vmem:[%s1118_s0] sm:$0xff]  ;;  %v18_v36 = vld [vmem:[%s1118_s0 + $0x8] sm:$0xff]  ;;  %v813_v40 = vld [vmem:[%s1117_s1 + $0x78] sm:$0xff] }
   0xc   :  { %167 = vmatpush.msra.mxu0 %v44_v8  ;;  %567 = vmatpush.msra.mxu1 %v44_v8  ;;  %v21_v30 = vld [vmem:[%s1118_s0 + $0x20] sm:$0xff]  ;;  %v22_v37 = vld [vmem:[%s1118_s0 + $0x28] sm:$0xff]  ;;  %v19_v42 = vld [vmem:[%s1118_s0 + $0x10] sm:$0xff] }
   0xd   :  { %568 = vmatpush.msra.mxu2 %v44_v8  ;;  %569 = vmatpush.msra.mxu3 %v44_v8  ;;  %v25_v31 = vld [vmem:[%s1118_s0 + $0x40] sm:$0xff]  ;;  %v26_v38 = vld [vmem:[%s1118_s0 + $0x48] sm:$0xff]  ;;  %v23_v43 = vld [vmem:[%s1118_s0 + $0x30] sm:$0xff] }
   0xe   :  { %93 = vperm.xlu2 %609, %v684_v9   ;;  %83 = vperm.xlu1 %608, %v689_v10   ;;  %v29_v32 = vld [vmem:[%s1118_s0 + $0x60] sm:$0xff]  ;;  %v30_v39 = vld [vmem:[%s1118_s0 + $0x68] sm:$0xff]  ;;  %v27_v44 = vld [vmem:[%s1118_s0 + $0x50] sm:$0xff] }
   0xf   :  { %73 = vperm.xlu0 %607, %v694_v11   ;;  %168 = vmatpush.msra.mxu0 %v43_v12  ;;  %v793_v35 = vld [vmem:[%s1117_s1 + $0x60] sm:$0xff]  ;;  %v31_v45 = vld [vmem:[%s1118_s0 + $0x70] sm:$0xff]  ;;  %v20_v46 = vld [vmem:[%s1118_s0 + $0x18] sm:$0xff] }
  0x10   :  { %570 = vmatpush.msra.mxu1 %v43_v12  ;;  %571 = vmatpush.msra.mxu2 %v43_v12  ;;  %v24_v47 = vld [vmem:[%s1118_s0 + $0x38] sm:$0xff]  ;;  %v899_v6 = vld [vmem:[%s1119_s3] sm:$0xff] }
  0x11   :  { %572 = vmatpush.msra.mxu3 %v43_v12  ;;  %169 = vmatpush.msra.mxu0 %v42_v13  ;;  %v28_v48 = vld [vmem:[%s1118_s0 + $0x58] sm:$0xff] }
  0x12   :  { %573 = vmatpush.msra.mxu1 %v42_v13  ;;  %574 = vmatpush.msra.mxu2 %v42_v13  ;;  %v32_v49 = vld [vmem:[%s1118_s0 + $0x78] sm:$0xff] }
  0x13   :  { %575 = vmatpush.msra.mxu3 %v42_v13  ;;  %170 = vmatpush.msra.mxu0 %v41_v14 }
  0x14   :  { %576 = vmatpush.msra.mxu1 %v41_v14  ;;  %577 = vmatpush.msra.mxu2 %v41_v14 }
  0x15   :  { %578 = vmatpush.msra.mxu3 %v41_v14  ;;  %171 = vmatpush.msra.mxu0 %v40_v15 }
  0x16   :  { %579 = vmatpush.msra.mxu1 %v40_v15  ;;  %580 = vmatpush.msra.mxu2 %v40_v15 }
  0x17   :  { %581 = vmatpush.msra.mxu3 %v40_v15  ;;  %108 = vperm.xlu2 %609, %v714_v16  }
  0x18   :  { %103 = vperm.xlu1 %608, %v719_v17   ;;  %98 = vperm.xlu0 %607, %v724_v18  }
  0x19   :  { %172 = vmatpush.msra.mxu0 %v39_v19  ;;  %582 = vmatpush.msra.mxu1 %v39_v19 }
  0x1a   :  { %583 = vmatpush.msra.mxu2 %v39_v19  ;;  %584 = vmatpush.msra.mxu3 %v39_v19 }
  0x1b   :  { %173 = vmatpush.msra.mxu0 %v38_v20  ;;  %585 = vmatpush.msra.mxu1 %v38_v20 }
  0x1c   :  { %586 = vmatpush.msra.mxu2 %v38_v20  ;;  %587 = vmatpush.msra.mxu3 %v38_v20 }
  0x1d   :  { %174 = vmatpush.msra.mxu0 %v37_v21  ;;  %588 = vmatpush.msra.mxu1 %v37_v21 }
  0x1e   :  { %589 = vmatpush.msra.mxu2 %v37_v21  ;;  %590 = vmatpush.msra.mxu3 %v37_v21 }
  0x1f   :  { %175 = vmatpush.msra.mxu0 %v36_v22  ;;  %591 = vmatpush.msra.mxu1 %v36_v22 }
  0x20   :  { %592 = vmatpush.msra.mxu2 %v36_v22  ;;  %593 = vmatpush.msra.mxu3 %v36_v22 }
  0x21   :  { %123 = vperm.xlu2 %609, %v744_v23   ;;  %118 = vperm.xlu1 %608, %v749_v24  }
  0x22   :  { %113 = vperm.xlu0 %607, %v754_v25   ;;  %176 = vmatpush.msra.mxu0 %v35_v26 }
  0x23   :  { %594 = vmatpush.msra.mxu1 %v35_v26  ;;  %595 = vmatpush.msra.mxu2 %v35_v26 }
  0x24   :  { %596 = vmatpush.msra.mxu3 %v35_v26  ;;  %177 = vmatpush.msra.mxu0 %v34_v27 }
  0x25   :  { %597 = vmatpush.msra.mxu1 %v34_v27  ;;  %598 = vmatpush.msra.mxu2 %v34_v27 }
  0x26   :  { %599 = vmatpush.msra.mxu3 %v34_v27  ;;  %178 = vmatpush.msra.mxu0 %v33_v28 }
  0x27   :  { %600 = vmatpush.msra.mxu1 %v33_v28  ;;  %601 = vmatpush.msra.mxu2 %v33_v28 }
  0x28   :  { %602 = vmatpush.msra.mxu3 %v33_v28  ;;  %179 = vmatmul.f32.vlgmr.msra.gmra.mxu0 %v17_v29 }
  0x29   :  { %191 = vmatmul.f32.vlgmr.msra.gmra.mxu1 %v21_v30  ;;  %203 = vmatmul.f32.vlgmr.msra.gmra.mxu2 %v25_v31 }
  0x2a   :  { %215 = vmatmul.f32.vlgmr.msra.gmra.mxu3 %v29_v32  ;;  %138 = vperm.xlu2 %609, %v783_v33  }
  0x2b   :  { %133 = vperm.xlu1 %608, %v788_v34   ;;  %128 = vperm.xlu0 %607, %v793_v35  }
  0x30   :  { %182 = vmatmul.f32.gmra.mxu0 %v18_v36 }
  0x31   :  { %194 = vmatmul.f32.gmra.mxu1 %v22_v37  ;;  %206 = vmatmul.f32.gmra.mxu2 %v26_v38 }
  0x32   :  { %218 = vmatmul.f32.gmra.mxu3 %v30_v39  ;;  %611 = vset.pattern.permute.xlu2 %v620_v41 }
  0x33   :  { %610 = vset.pattern.permute.xlu1 %v620_v41  ;;  %143 = vperm.xlu0 %607, %v813_v40  }
  0x34   :  { %233 = vperm.xlu2 %611, %v694_v11   ;;  %229 = vperm.xlu1 %610, %v664_v4  }
  0x38   :  { %185 = vmatmul.f32.gmra.mxu0 %v19_v42 }
  0x39   :  { %197 = vmatmul.f32.gmra.mxu1 %v23_v43  ;;  %209 = vmatmul.f32.gmra.mxu2 %v27_v44 }
  0x3a   :  { %221 = vmatmul.f32.gmra.mxu3 %v31_v45 }
  0x3b   :  { %612 = vset.pattern.permute.xlu0 %v620_v41 }
  0x3c   :  { %245 = vperm.xlu2 %611, %v654_v2   ;;  %241 = vperm.xlu1 %610, %v689_v10  }
  0x3d   :  { %237 = vperm.xlu0 %612, %v659_v3  }
  0x40   :  { %188 = vmatmul.f32.gmra.mxu0 %v20_v46 }
  0x41   :  { %200 = vmatmul.f32.gmra.mxu1 %v24_v47  ;;  %212 = vmatmul.f32.gmra.mxu2 %v28_v48 }
  0x42   :  { %224 = vmatmul.f32.gmra.mxu3 %v32_v49 }
  0x44   :  { %253 = vperm.xlu2 %611, %v724_v18   ;;  %249 = vperm.xlu1 %610, %v684_v9  }
  0x45   :  { %257 = vperm.xlu0 %612, %v719_v17  }
  0x4c   :  { %265 = vperm.xlu2 %611, %v754_v25   ;;  %261 = vperm.xlu1 %610, %v714_v16  }
  0x4d   :  { %269 = vperm.xlu0 %612, %v749_v24  }
  0x54   :  { %277 = vperm.xlu2 %611, %v793_v35   ;;  %273 = vperm.xlu1 %610, %v744_v23  }
  0x55   :  { %281 = vperm.xlu0 %612, %v788_v34  }
  0x5c   :  { %289 = vperm.xlu2 %611, %v813_v40   ;;  %285 = vperm.xlu1 %610, %v783_v33  }
  0x5d   :  { %613 = vset.pattern.permute.xlu0 %v621_v50 }
  0x5e   :  { %326 = vperm.xlu0 %613, %v664_v4   ;;  %v89_v51 = vpop.permute.xlu2 %88 }
  0x64   :  { %615 = vset.pattern.permute.xlu2 %v621_v50  ;;  %614 = vset.pattern.permute.xlu1 %v621_v50 }
  0x65   :  { %334 = vperm.xlu2 %615, %v659_v3   ;;  %330 = vperm.xlu1 %614, %v694_v11  }
  0x66   :  { %346 = vperm.xlu0 %613, %v684_v9  }
  0x68   :  { %v860_v52 = vpop.permute.xlu2 %93 }
  0x6d   :  { %342 = vperm.xlu2 %615, %v654_v2   ;;  %338 = vperm.xlu1 %614, %v689_v10  }
  0x6e   :  { %358 = vperm.xlu0 %613, %v714_v16  }
  0x71   :  { %v865_v53 = vpop.permute.xlu2 %108 }
  0x75   :  { %354 = vperm.xlu2 %615, %v719_v17   ;;  %350 = vperm.xlu1 %614, %v724_v18  }
  0x76   :  { %370 = vperm.xlu0 %613, %v744_v23  }
  0x77   :  { %v870_v54 = vpop.permute.xlu1 %78  ;;  %v872_v55 = vpop.permute.xlu0 %68 }
  0x7b   :  { %v874_v56 = vpop.permute.xlu2 %123 }
  0x7d   :  { %366 = vperm.xlu2 %615, %v749_v24   ;;  %362 = vperm.xlu1 %614, %v754_v25  }
  0x7e   :  { %382 = vperm.xlu0 %613, %v783_v33  }
  0x80   :  { %v879_v57 = vpop.permute.xlu1 %83 }
  0x81   :  { %v74_v58 = vpop.permute.xlu0 %73 }
  0x84   :  { %v881_v59 = vpop.permute.xlu2 %138 }
  0x85   :  { %378 = vperm.xlu2 %615, %v788_v34   ;;  %374 = vperm.xlu1 %614, %v793_v35  }
  0x86   :  { %617 = vset.pattern.permute.xlu0 %v622_v60 }
  0x87   :  { %427 = vperm.xlu0 %617, %v694_v11  }
  0x8a   :  { %v886_v61 = vpop.permute.xlu1 %103  ;;  %v99_v62 = vpop.permute.xlu0 %98 }
  0x8d   :  { %616 = vset.pattern.permute.xlu2 %v622_v60  ;;  %386 = vperm.xlu1 %614, %v813_v40  }
  0x8e   :  { %v234_v63 = vpop.permute.xlu2 %233  ;;  %423 = vperm.xlu2 %616, %v664_v4   ;;  %v902_v4 = vperm.slane %v899_v6, 0 }
  0x8f   :  { %447 = vperm.xlu0 %617, %v724_v18  }
  0x90   :  { %v151_v14 = vmul.f32 %v902_v4, %v89_v51  ;;  %v148_v21 = vmul.f32 %v902_v4, %v74_v58  ;;  %v149_v39 = vmul.f32 %v902_v4, %v870_v54  ;;  %v153_v44 = vmul.f32 %v902_v4, %v99_v62 }
  0x93   :  { %v891_v0 = vpop.permute.xlu1 %118 }
  0x94   :  { %v114_v1 = vpop.permute.xlu0 %113  ;;  %v157_v62 = vmul.f32 %v902_v4, %v891_v0 }
  0x95   :  { %618 = vset.pattern.permute.xlu1 %v622_v60  ;;  %v156_v38 = vmul.f32 %v902_v4, %v114_v1 }
  0x96   :  { %v246_v5 = vpop.permute.xlu2 %245  ;;  %435 = vperm.xlu2 %616, %v689_v10   ;;  %431 = vperm.xlu1 %618, %v659_v3   ;;  %v911_v3 = vperm.slane %v899_v6, 1 }
  0x97   :  { %459 = vperm.xlu0 %617, %v754_v25  }
  0x98   :  { %v297_v15 = vmul.f32 %v911_v3, %v246_v5 }
  0x9d   :  { %v134_v7 = vpop.permute.xlu1 %133  ;;  %v129_v8 = vpop.permute.xlu0 %128 }
  0x9e   :  { %v905_v11 = vmul.f32 %v902_v4, %v134_v7  ;;  %v254_v12 = vpop.permute.xlu2 %253  ;;  %443 = vperm.xlu2 %616, %v684_v9   ;;  %439 = vperm.xlu1 %618, %v654_v2   ;;  %v159_v22 = vmul.f32 %v902_v4, %v129_v8  ;;  %v154_v7 = vmul.f32 %v902_v4, %v886_v61 }
  0x9f   :  { %471 = vperm.xlu0 %617, %v793_v35   ;;  %v299_v51 = vmul.f32 %v911_v3, %v254_v12 }
  0xa5   :  { %v913_v10 = vpop.permute.xlu0 %143  ;;  %v915_v13 = vpop.f32.mrf.mxu0 }
  0xa6   :  { %v266_v18 = vpop.permute.xlu2 %265  ;;  %455 = vperm.xlu2 %616, %v714_v16   ;;  %451 = vperm.xlu1 %618, %v719_v17   ;;  %v921_v9 = vpop.permute.xlu1 %229  ;;  %v294_v16 = vmul.f32 %v911_v3, %v234_v63 }
  0xa7   :  { %483 = vperm.xlu0 %617, %v813_v40   ;;  %v192_v2 = vpop.f32.mrf.mxu1  ;;  %v302_v40 = vmul.f32 %v911_v3, %v266_v18 }
  0xa8   :  { %v193_v19 = vadd.f32 %v192_v2, %v151_v14 }
  0xaa   :  { %v924_v20 = vadd.f32 %v297_v15, %v193_v19 }
  0xac   :  { %v928_v25 = vpop.f32.mrf.mxu2 }
  0xad   :  { %v216_v26 = vpop.f32.mrf.mxu3  ;;  %v183_v27 = vpop.f32.mrf.mxu0 }
  0xae   :  { %v217_v28 = vadd.f32 %v216_v26, %v159_v22  ;;  %v278_v17 = vpop.permute.xlu2 %277  ;;  %467 = vperm.xlu2 %616, %v744_v23   ;;  %463 = vperm.xlu1 %618, %v749_v24   ;;  %v933_v29 = vpop.permute.xlu1 %241  ;;  %v184_v30 = vadd.f32 %v183_v27, %v148_v21  ;;  %v162_v26 = vmul.f32 %v902_v4, %v913_v10 }
  0xaf   :  { %v305_v31 = vmul.f32 %v911_v3, %v278_v17  ;;  %v238_v32 = vpop.permute.xlu0 %237  ;;  %v936_v35 = vpop.f32.mrf.mxu1 }
  0xb0   :  { %v938_v36 = vadd.f32 %v294_v16, %v184_v30  ;;  %v295_v23 = vmul.f32 %v911_v3, %v238_v32 }
  0xb1   :  { %v940_v37 = vadd.f32 %v305_v31, %v217_v28 }
  0xb4   :  { %v207_v24 = vpop.f32.mrf.mxu2 }
  0xb5   :  { %v208_v41 = vadd.f32 %v207_v24, %v156_v38  ;;  %v219_v42 = vpop.f32.mrf.mxu3  ;;  %v186_v43 = vpop.f32.mrf.mxu0 }
  0xb6   :  { %v290_v45 = vpop.permute.xlu2 %289  ;;  %479 = vperm.xlu2 %616, %v783_v33   ;;  %475 = vperm.xlu1 %618, %v788_v34   ;;  %v950_v46 = vpop.permute.xlu1 %249  ;;  %v187_v47 = vadd.f32 %v186_v43, %v149_v39  ;;  %v960_v33 = vperm.slane %v899_v6, 2  ;;  %v220_v31 = vadd.f32 %v219_v42, %v905_v11 }
  0xb7   :  { %v952_v48 = vadd.f32 %v302_v40, %v208_v41  ;;  %v258_v49 = vpop.permute.xlu0 %257  ;;  %v198_v50 = vpop.f32.mrf.mxu1  ;;  %v308_v61 = vmul.f32 %v911_v3, %v290_v45 }
  0xb8   :  { %v311_v54 = vadd.f32 %v295_v23, %v187_v47  ;;  %v199_v58 = vadd.f32 %v198_v50, %v153_v44  ;;  %v300_v8 = vmul.f32 %v911_v3, %v258_v49 }
  0xba   :  { %v955_v60 = vadd.f32 %v299_v51, %v199_v58  ;;  %v147_v58 = vmul.f32 %v902_v4, %v872_v55  ;;  %v150_v55 = vmul.f32 %v902_v4, %v879_v57 }
  0xbc   :  { %v210_v63 = vpop.f32.mrf.mxu2 }
  0xbd   :  { %v962_v34 = vpop.f32.mrf.mxu3  ;;  %v211_v1 = vadd.f32 %v210_v63, %v157_v62  ;;  %v293_v63 = vmul.f32 %v911_v3, %v921_v9 }
  0xbe   :  { %v964_v5 = vpop.permute.xlu1 %261 }
  0xbf   :  { %v270_v12 = vpop.permute.xlu0 %269  ;;  %v335_v14 = vpop.permute.xlu2 %334 }
  0xc0   :  { %v303_v15 = vmul.f32 %v911_v3, %v270_v12  ;;  %v392_v0 = vmul.f32 %v960_v33, %v335_v14  ;;  %v201_v18 = vpop.f32.mrf.mxu1  ;;  %v189_v14 = vpop.f32.mrf.mxu0 }
  0xc1   :  { %v202_v2 = vadd.f32 %v201_v18, %v154_v7 }
  0xc2   :  { %v319_v19 = vadd.f32 %v303_v15, %v211_v1  ;;  %v971_v21 = vadd.f32 %v392_v0, %v311_v54  ;;  %v181_v1 = vadd.f32 %v915_v13, %v147_v58  ;;  %v296_v13 = vmul.f32 %v911_v3, %v933_v29 }
  0xc3   :  { %v316_v22 = vadd.f32 %v300_v8, %v202_v2  ;;  %v1004_v8 = vperm.slane %v899_v6, 3  ;;  %v298_v29 = vmul.f32 %v911_v3, %v950_v46 }
  0xc4   :  { %v309_v12 = vadd.f32 %v293_v63, %v181_v1 }
  0xc5   :  { %v225_v27 = vpop.f32.mrf.mxu3 }
  0xc6   :  { %v226_v16 = vadd.f32 %v225_v27, %v162_v26  ;;  %v976_v28 = vpop.permute.xlu1 %273 }
  0xc7   :  { %v282_v17 = vpop.permute.xlu0 %281  ;;  %v343_v30 = vpop.permute.xlu2 %342 }
  0xc8   :  { %v979_v32 = vadd.f32 %v308_v61, %v226_v16  ;;  %v306_v38 = vmul.f32 %v911_v3, %v282_v17  ;;  %v394_v39 = vmul.f32 %v960_v33, %v343_v30 }
  0xca   :  { %v322_v23 = vadd.f32 %v306_v38, %v220_v31  ;;  %v984_v24 = vadd.f32 %v394_v39, %v924_v20  ;;  %v152_v31 = vmul.f32 %v902_v4, %v860_v52 }
  0xcc   :  { %v196_v39 = vadd.f32 %v936_v35, %v152_v31 }
  0xce   :  { %v986_v10 = vpop.permute.xlu1 %285 }
  0xcf   :  { %v355_v40 = vpop.permute.xlu2 %354 }
  0xd0   :  { %v397_v41 = vmul.f32 %v960_v33, %v355_v40  ;;  %v327_v43 = vpop.permute.xlu0 %326 }
  0xd1   :  { %v390_v7 = vmul.f32 %v960_v33, %v327_v43  ;;  %v314_v43 = vadd.f32 %v298_v29, %v196_v39  ;;  %v161_v39 = vmul.f32 %v902_v4, %v881_v59 }
  0xd2   :  { %v989_v44 = vadd.f32 %v397_v41, %v316_v22  ;;  %v190_v22 = vadd.f32 %v189_v14, %v150_v55 }
  0xd3   :  { %v406_v2 = vadd.f32 %v390_v7, %v309_v12 }
  0xd4   :  { %v312_v27 = vadd.f32 %v296_v13, %v190_v22 }
  0xd7   :  { %v367_v45 = vpop.permute.xlu2 %366  ;;  %v331_v11 = vpop.permute.xlu1 %330 }
  0xd8   :  { %v400_v42 = vmul.f32 %v960_v33, %v367_v45  ;;  %v347_v47 = vpop.permute.xlu0 %346  ;;  %v391_v41 = vmul.f32 %v960_v33, %v331_v11  ;;  %v301_v11 = vmul.f32 %v911_v3, %v964_v5 }
  0xda   :  { %v992_v49 = vadd.f32 %v400_v42, %v319_v19  ;;  %v407_v46 = vadd.f32 %v391_v41, %v938_v36 }
  0xdf   :  { %v379_v50 = vpop.permute.xlu2 %378  ;;  %v339_v51 = vpop.permute.xlu1 %338 }
  0xe0   :  { %v403_v20 = vmul.f32 %v960_v33, %v379_v50  ;;  %v359_v54 = vpop.permute.xlu0 %358  ;;  %v393_v26 = vmul.f32 %v960_v33, %v339_v51 }
  0xe1   :  { %v398_v1 = vmul.f32 %v960_v33, %v359_v54 }
  0xe2   :  { %v997_v62 = vadd.f32 %v403_v20, %v322_v23  ;;  %v409_v17 = vadd.f32 %v393_v26, %v312_v27  ;;  %v395_v23 = vmul.f32 %v960_v33, %v347_v47  ;;  %v155_v47 = vmul.f32 %v902_v4, %v865_v53  ;;  %v213_v53 = vpop.f32.mrf.mxu2 }
  0xe4   :  { %v411_v50 = vadd.f32 %v395_v23, %v314_v43  ;;  %v205_v63 = vadd.f32 %v928_v25, %v155_v47  ;;  %v158_v25 = vmul.f32 %v902_v4, %v874_v56  ;;  %v307_v23 = vmul.f32 %v911_v3, %v986_v10 }
  0xe6   :  { %v214_v22 = vadd.f32 %v213_v53, %v158_v25 }
  0xe7   :  { %v351_v15 = vpop.permute.xlu1 %350 }
  0xe8   :  { %v371_v0 = vpop.permute.xlu0 %370  ;;  %v424_v18 = vpop.permute.xlu2 %423  ;;  %v396_v12 = vmul.f32 %v960_v33, %v351_v15 }
  0xe9   :  { %v487_v19 = vmul.f32 %v1004_v8, %v424_v18  ;;  %v317_v18 = vadd.f32 %v301_v11, %v205_v63 }
  0xeb   :  { %v503_v9 = vadd.f32 %v487_v19, %v406_v2  ;;  %v414_v54 = vadd.f32 %v398_v1, %v317_v18  ;;  %v412_v2 = vadd.f32 %v396_v12, %v955_v60 }
  0xed   :  { %v519_v6 = vmul.f32 %v503_v9, %v503_v9  ;;  %v304_v9 = vmul.f32 %v911_v3, %v976_v28 }
  0xef   :  { %535 = vst [vmem:[%s1120_s4] sm:$0xff] %v519_v6  ;;  %v363_v61 = vpop.permute.xlu1 %362  ;;  %v401_v6 = vmul.f32 %v960_v33, %v371_v0 }
  0xf0   :  { %v1015_v16 = vpop.permute.xlu0 %382  ;;  %v436_v57 = vpop.permute.xlu2 %435 }
  0xf1   :  { %v490_v30 = vmul.f32 %v1004_v8, %v436_v57  ;;  %v399_v57 = vmul.f32 %v960_v33, %v363_v61 }
  0xf3   :  { %v506_v38 = vadd.f32 %v490_v30, %v409_v17  ;;  %v320_v17 = vadd.f32 %v304_v9, %v214_v22  ;;  %v415_v61 = vadd.f32 %v399_v57, %v952_v48 }
  0xf5   :  { %v522_v40 = vmul.f32 %v506_v38, %v506_v38  ;;  %v417_v28 = vadd.f32 %v401_v6, %v320_v17 }
  0xf7   :  { %538 = vst [vmem:[%s1120_s4 + $0x18] sm:$0xff] %v522_v40  ;;  %v375_v45 = vpop.permute.xlu1 %374 }
  0xf8   :  { %v444_v42 = vpop.permute.xlu2 %443  ;;  %v402_v48 = vmul.f32 %v960_v33, %v375_v45 }
  0xf9   :  { %v492_v52 = vmul.f32 %v1004_v8, %v444_v42  ;;  %v428_v51 = vpop.permute.xlu0 %427  ;;  %v223_v42 = vadd.f32 %v962_v34, %v161_v39 }
  0xfa   :  { %v488_v35 = vmul.f32 %v1004_v8, %v428_v51 }
  0xfb   :  { %v508_v20 = vadd.f32 %v492_v52, %v411_v50  ;;  %v404_v50 = vmul.f32 %v960_v33, %v1015_v16  ;;  %v418_v16 = vadd.f32 %v402_v48, %v940_v37 }
  0xfc   :  { %v504_v58 = vadd.f32 %v488_v35, %v407_v46  ;;  %v323_v35 = vadd.f32 %v307_v23, %v223_v42 }
  0xfd   :  { %v524_v7 = vmul.f32 %v508_v20, %v508_v20 }
  0xfe   :  { %v520_v14 = vmul.f32 %v504_v58, %v504_v58  ;;  %v420_v3 = vadd.f32 %v404_v50, %v323_v35 }
  0xff   :  { %540 = vst [vmem:[%s1120_s4 + $0x28] sm:$0xff] %v524_v7  ;;  %v387_v36 = vpop.permute.xlu1 %386 }
 0x100   :  { %536 = vst [vmem:[%s1120_s4 + $0x8] sm:$0xff] %v520_v14  ;;  %v456_v5 = vpop.permute.xlu2 %455  ;;  %v405_v1 = vmul.f32 %v960_v33, %v387_v36 }
 0x101   :  { %v495_v55 = vmul.f32 %v1004_v8, %v456_v5  ;;  %v448_v15 = vpop.permute.xlu0 %447 }
 0x102   :  { %v493_v19 = vmul.f32 %v1004_v8, %v448_v15  ;;  %v421_v14 = vadd.f32 %v405_v1, %v979_v32 }
 0x103   :  { %v511_v13 = vadd.f32 %v495_v55, %v414_v54 }
 0x104   :  { %v509_v26 = vadd.f32 %v493_v19, %v412_v2 }
 0x105   :  { %v527_v27 = vmul.f32 %v511_v13, %v511_v13 }
 0x106   :  { %v525_v56 = vmul.f32 %v509_v26, %v509_v26 }
 0x107   :  { %543 = vst [vmem:[%s1120_s4 + $0x40] sm:$0xff] %v527_v27 }
 0x108   :  { %541 = vst [vmem:[%s1120_s4 + $0x30] sm:$0xff] %v525_v56  ;;  %v468_v60 = vpop.permute.xlu2 %467  ;;  %v432_v30 = vpop.permute.xlu1 %431 }
 0x109   :  { %v498_v31 = vmul.f32 %v1004_v8, %v468_v60  ;;  %v489_v0 = vmul.f32 %v1004_v8, %v432_v30  ;;  %v460_v29 = vpop.permute.xlu0 %459 }
 0x10a   :  { %v496_v38 = vmul.f32 %v1004_v8, %v460_v29 }
 0x10b   :  { %v514_v40 = vadd.f32 %v498_v31, %v417_v28  ;;  %v505_v41 = vadd.f32 %v489_v0, %v971_v21 }
 0x10c   :  { %v512_v43 = vadd.f32 %v496_v38, %v415_v61 }
 0x10d   :  { %v530_v52 = vmul.f32 %v514_v40, %v514_v40  ;;  %v521_v51 = vmul.f32 %v505_v41, %v505_v41 }
 0x10e   :  { %v528_v46 = vmul.f32 %v512_v43, %v512_v43 }
 0x10f   :  { %546 = vst [vmem:[%s1120_s4 + $0x58] sm:$0xff] %v530_v52 }
 0x110   :  { %537 = vst [vmem:[%s1120_s4 + $0x10] sm:$0xff] %v521_v51  ;;  %v480_v59 = vpop.permute.xlu2 %479  ;;  %v440_v4 = vpop.permute.xlu1 %439 }
 0x111   :  { %544 = vst [vmem:[%s1120_s4 + $0x48] sm:$0xff] %v528_v46  ;;  %v501_v34 = vmul.f32 %v1004_v8, %v480_v59  ;;  %v491_v21 = vmul.f32 %v1004_v8, %v440_v4  ;;  %v472_v10 = vpop.permute.xlu0 %471 }
 0x112   :  { %v499_v45 = vmul.f32 %v1004_v8, %v472_v10 }
 0x113   :  { %v517_v47 = vadd.f32 %v501_v34, %v420_v3  ;;  %v507_v11 = vadd.f32 %v491_v21, %v984_v24 }
 0x114   :  { %v515_v20 = vadd.f32 %v499_v45, %v418_v16 }
 0x115   :  { %v533_v58 = vmul.f32 %v517_v47, %v517_v47  ;;  %v523_v63 = vmul.f32 %v507_v11, %v507_v11 }
 0x116   :  { %v531_v7 = vmul.f32 %v515_v20, %v515_v20 }
 0x117   :  { %549 = vst [vmem:[%s1120_s4 + $0x70] sm:$0xff] %v533_v58 }
 0x118   :  { %539 = vst [vmem:[%s1120_s4 + $0x20] sm:$0xff] %v523_v63  ;;  %v452_v37 = vpop.permute.xlu1 %451 }
 0x119   :  { %547 = vst [vmem:[%s1120_s4 + $0x60] sm:$0xff] %v531_v7  ;;  %v494_v24 = vmul.f32 %v1004_v8, %v452_v37  ;;  %v484_v12 = vpop.permute.xlu0 %483 }
 0x11a   :  { %v502_v33 = vmul.f32 %v1004_v8, %v484_v12 }
 0x11b   :  { %v510_v18 = vadd.f32 %v494_v24, %v989_v44 }
 0x11c   :  { %v518_v36 = vadd.f32 %v502_v33, %v421_v14 }
 0x11d   :  { %v526_v53 = vmul.f32 %v510_v18, %v510_v18 }
 0x11e   :  { %v534_v5 = vmul.f32 %v518_v36, %v518_v36 }
 0x11f   :  { %542 = vst [vmem:[%s1120_s4 + $0x38] sm:$0xff] %v526_v53 }
 0x120   :  { %550 = vst [vmem:[%s1120_s4 + $0x78] sm:$0xff] %v534_v5  ;;  %v464_v25 = vpop.permute.xlu1 %463 }
 0x121   :  { %v497_v54 = vmul.f32 %v1004_v8, %v464_v25 }
 0x123   :  { %v513_v32 = vadd.f32 %v497_v54, %v992_v49 }
 0x125   :  { %v529_v55 = vmul.f32 %v513_v32, %v513_v32 }
 0x127   :  { %545 = vst [vmem:[%s1120_s4 + $0x50] sm:$0xff] %v529_v55 }
 0x128   :  { %v476_v44 = vpop.permute.xlu1 %475 }
 0x129   :  { %v500_v15 = vmul.f32 %v1004_v8, %v476_v44 }
 0x12b   :  { %v516_v2 = vadd.f32 %v500_v15, %v997_v62 }
 0x12d   :  { %v532_v19 = vmul.f32 %v516_v2, %v516_v2 }
 0x12f   :  { %548 = vst [vmem:[%s1120_s4 + $0x68] sm:$0xff] %v532_v19 }

</bundles_post_ra>
